<compile_context>
chip_gen: v5e
topology: v5e:2x2
jax: 0.10.0
libtpu: 0.0.40
codegen_flags: <defaults>
</compile_context>

<pallas_src>
import functools

import jax
import jax.numpy as jnp
from jax.experimental import pallas as pl
from jax.experimental.pallas import tpu as pltpu

# Small, TPU-friendly demo sizes (the VAE operates on flattened images (N, D)).
N = 8        # batch
D = 64       # flattened image dim
H = 32       # hidden width of encoder/decoder MLPs
LATENT = 16  # latent size (encoder output is 2*LATENT, chunked into mu/log_var)


def _round_up(v, m):
    return ((v + m - 1) // m) * m


def _vae_kernel(x_ref, eps_ref,
                w1_ref, b1_ref,    # encoder layer 1: D -> H
                w2_ref, b2_ref,    # fused encoder head: H -> 2*W  (mu | log_var)
                w3_ref, b3_ref,    # decoder layer 1: latent -> H
                w4_ref, b4_ref,    # decoder layer 2: H -> D
                out_ref,           # packed (3, TILE_N, W): recons / mu / log_var
                *, width):
    f32 = jnp.float32
    bf16 = jnp.bfloat16

    # ----- encode: Linear -> ReLU (bf16 operands, f32 accumulate) -----
    h = jnp.dot(x_ref[...], w1_ref[...], preferred_element_type=f32) + b1_ref[...]
    h = jnp.maximum(h, 0.0)

    # Fused mu / log_var head: one matmul, slice at the 128-aligned lane boundary.
    enc = jnp.dot(h.astype(bf16), w2_ref[...], preferred_element_type=f32) + b2_ref[...]
    mu = enc[:, :width]
    log_var = enc[:, width:]

    # ----- reparameterize (f32 epilogue): z = mu + eps * exp(0.5 * log_var) -----
    std = jnp.exp(0.5 * log_var)                   # EUP
    z = mu + eps_ref[...].astype(f32) * std        # padded lanes stay exactly zero

    # ----- decode: Linear -> ReLU -> Linear -> sigmoid -----
    dh = jnp.dot(z.astype(bf16), w3_ref[...], preferred_element_type=f32) + b3_ref[...]
    dh = jnp.maximum(dh, 0.0)
    logits = jnp.dot(dh.astype(bf16), w4_ref[...], preferred_element_type=f32) + b4_ref[...]

    # ----- lane-dense packed output slab (unmasked full-tile stores) -----
    out_ref[0, :, :] = jax.nn.sigmoid(logits)
    out_ref[1, :, :] = mu
    out_ref[2, :, :] = log_var


def vae_forward(x, eps, params, *, tile_n=None):
    """Fused VAE forward. x: (N, D) f32, eps: (N, latent) f32.
    Returns (recons (N, D), mu (N, latent), log_var (N, latent)) in f32."""
    n, d = x.shape
    latent = eps.shape[1]
    h_dim = params["w1"].shape[1]

    f32, bf16 = jnp.float32, jnp.bfloat16

    # One common lane-padded feature width for D and latent (>=128, multiple of
    # 128) keeps every activation / output tile the same clean (TILE_N, W) shape.
    W = max(_round_up(d, 128), _round_up(latent, 128))
    HP = _round_up(h_dim, 128)

    if tile_n is None:
        tile_n = min(max(_round_up(n, 8), 8), 256)
    n_pad = _round_up(n, tile_n)

    def pad2(a, rows, cols, dtype):
        out = jnp.zeros((rows, cols), dtype)
        return out.at[: a.shape[0], : a.shape[1]].set(a.astype(dtype))

    # Activations: bf16, zero-padded to lane-dense widths.
    x_p = pad2(x, n_pad, W, bf16)
    eps_p = pad2(eps, n_pad, W, bf16)

    # Weights: bf16 zero-padded. Biases: f32 (epilogue math stays f32), lane-padded.
    w1_p = pad2(params["w1"], W, HP, bf16)
    b1_p = pad2(params["b1"].reshape(1, -1), 1, HP, f32)

    # Fused encoder head: mu columns at [0, latent), log_var columns at [W, W+latent).
    w2 = params["w2"]                      # (H, 2*latent): [mu | log_var] (torch .chunk)
    b2 = params["b2"].reshape(1, -1)
    w2_p = jnp.zeros((HP, 2 * W), bf16)
    w2_p = w2_p.at[:h_dim, :latent].set(w2[:, :latent].astype(bf16))
    w2_p = w2_p.at[:h_dim, W:W + latent].set(w2[:, latent:].astype(bf16))
    b2_p = jnp.zeros((1, 2 * W), f32)
    b2_p = b2_p.at[:, :latent].set(b2[:, :latent].astype(f32))
    b2_p = b2_p.at[:, W:W + latent].set(b2[:, latent:].astype(f32))

    w3_p = pad2(params["w3"], W, HP, bf16)
    b3_p = pad2(params["b3"].reshape(1, -1), 1, HP, f32)
    w4_p = pad2(params["w4"], HP, W, bf16)
    b4_p = pad2(params["b4"].reshape(1, -1), 1, W, f32)

    grid = (n_pad // tile_n,)
    batch_spec = lambda cols: pl.BlockSpec((tile_n, cols), lambda i: (i, 0))
    full_spec = lambda a: pl.BlockSpec(a.shape, lambda i: tuple(0 for _ in a.shape))

    kernel = functools.partial(_vae_kernel, width=W)

    out = pl.pallas_call(
        kernel,
        out_shape=jax.ShapeDtypeStruct((3, n_pad, W), f32),
        grid=grid,
        in_specs=[
            batch_spec(W),        # x
            batch_spec(W),        # eps
            full_spec(w1_p), full_spec(b1_p),
            full_spec(w2_p), full_spec(b2_p),
            full_spec(w3_p), full_spec(b3_p),
            full_spec(w4_p), full_spec(b4_p),
        ],
        out_specs=pl.BlockSpec((3, tile_n, W), lambda i: (0, i, 0)),
        compiler_params=pltpu.CompilerParams(
            dimension_semantics=("parallel",),   # shard batch tiles across TCs on v7x
        ),
    )(x_p, eps_p, w1_p, b1_p, w2_p, b2_p, w3_p, b3_p, w4_p, b4_p)

    recons = out[0, :n, :d]
    mu = out[1, :n, :latent]
    log_var = out[2, :n, :latent]
    return recons, mu, log_var


def init_params(key):
    """Deterministic synthetic parameters (shapes implied by the module)."""
    ks = jax.random.split(key, 8)
    s = 0.1
    return {
        # encoder
        "w1": s * jax.random.normal(ks[0], (D, H), jnp.float32),
        "b1": 0.05 * jax.random.normal(ks[1], (H,), jnp.float32),
        "w2": s * jax.random.normal(ks[2], (H, 2 * LATENT), jnp.float32),
        "b2": 0.05 * jax.random.normal(ks[3], (2 * LATENT,), jnp.float32),
        # decoder
        "w3": s * jax.random.normal(ks[4], (LATENT, H), jnp.float32),
        "b3": 0.05 * jax.random.normal(ks[5], (H,), jnp.float32),
        "w4": s * jax.random.normal(ks[6], (H, D), jnp.float32),
        "b4": 0.05 * jax.random.normal(ks[7], (D,), jnp.float32),
    }


def reference_forward(x, eps, p):
    """Pure-JAX reference mirroring the kernel's mixed precision
    (bf16 matmul operands, f32 accumulation and f32 elementwise epilogue)."""
    bf16, f32 = jnp.bfloat16, jnp.float32
    dot = lambda a, b: jnp.dot(a.astype(bf16), b.astype(bf16), preferred_element_type=f32)
    h = jnp.maximum(dot(x, p["w1"]) + p["b1"], 0.0)
    enc = dot(h, p["w2"]) + p["b2"]
    mu, log_var = enc[:, :LATENT], enc[:, LATENT:]
    z = mu + eps.astype(bf16).astype(f32) * jnp.exp(0.5 * log_var)
    dh = jnp.maximum(dot(z, p["w3"]) + p["b3"], 0.0)
    recons = jax.nn.sigmoid(dot(dh, p["w4"]) + p["b4"])
    return recons, mu, log_var


if __name__ == "__main__":
    key = jax.random.PRNGKey(0)
    k_param, k_x, k_eps = jax.random.split(key, 3)

    params = init_params(k_param)
    x = jax.random.uniform(k_x, (N, D), jnp.float32)          # "images" in [0, 1)
    eps = jax.random.normal(k_eps, (N, LATENT), jnp.float32)  # reparameterization noise

    recons, mu, log_var = jax.block_until_ready(vae_forward(x, eps, params))

    r_ref, mu_ref, lv_ref = reference_forward(x, eps, params)
    assert recons.shape == (N, D) and mu.shape == (N, LATENT) and log_var.shape == (N, LATENT)
    assert jnp.allclose(recons, r_ref, atol=2e-3, rtol=2e-3)
    assert jnp.allclose(mu, mu_ref, atol=2e-3, rtol=2e-3)
    assert jnp.allclose(log_var, lv_ref, atol=2e-3, rtol=2e-3)

    print("KERNEL_OK")
</pallas_src>

<mosaic_0001>
module attributes {stable_mosaic.version = 11 : i64} {
  func.func @_vae_kernel(%arg0: i32, %arg1: memref<8x128xbf16, #tpu.memory_space<vmem>>, %arg2: memref<8x128xbf16, #tpu.memory_space<vmem>>, %arg3: memref<128x128xbf16, #tpu.memory_space<vmem>>, %arg4: memref<1x128xf32, #tpu.memory_space<vmem>>, %arg5: memref<128x256xbf16, #tpu.memory_space<vmem>>, %arg6: memref<1x256xf32, #tpu.memory_space<vmem>>, %arg7: memref<128x128xbf16, #tpu.memory_space<vmem>>, %arg8: memref<1x128xf32, #tpu.memory_space<vmem>>, %arg9: memref<128x128xbf16, #tpu.memory_space<vmem>>, %arg10: memref<1x128xf32, #tpu.memory_space<vmem>>, %arg11: memref<3x8x128xf32, #tpu.memory_space<vmem>>) attributes {dimension_semantics = [#tpu.dimension_semantics<parallel>], iteration_bounds = array<i64: 1>, scalar_prefetch = 0 : i64, scratch_operands = 0 : i64, tpu.core_type = #tpu.core_type<tc>, window_params = [{transform_indices = @transform_0, window_bounds = array<i64: 8, 128>}, {transform_indices = @transform_1, window_bounds = array<i64: 8, 128>}, {pipeline_mode = #tpu.pipeline_mode<synchronous>, transform_indices = @transform_2, window_bounds = array<i64: 128, 128>}, {pipeline_mode = #tpu.pipeline_mode<synchronous>, transform_indices = @transform_3, window_bounds = array<i64: 1, 128>}, {pipeline_mode = #tpu.pipeline_mode<synchronous>, transform_indices = @transform_4, window_bounds = array<i64: 128, 256>}, {pipeline_mode = #tpu.pipeline_mode<synchronous>, transform_indices = @transform_5, window_bounds = array<i64: 1, 256>}, {pipeline_mode = #tpu.pipeline_mode<synchronous>, transform_indices = @transform_6, window_bounds = array<i64: 128, 128>}, {pipeline_mode = #tpu.pipeline_mode<synchronous>, transform_indices = @transform_7, window_bounds = array<i64: 1, 128>}, {pipeline_mode = #tpu.pipeline_mode<synchronous>, transform_indices = @transform_8, window_bounds = array<i64: 128, 128>}, {pipeline_mode = #tpu.pipeline_mode<synchronous>, transform_indices = @transform_9, window_bounds = array<i64: 1, 128>}, {transform_indices = @transform_10, window_bounds = array<i64: 3, 8, 128>}]} {
    %c0 = arith.constant 0 : index
    %c0_0 = arith.constant 0 : index
    %0 = vector.load %arg1[%c0, %c0_0] : memref<8x128xbf16, #tpu.memory_space<vmem>>, vector<8x128xbf16>
    %c0_1 = arith.constant 0 : index
    %c0_2 = arith.constant 0 : index
    %1 = vector.load %arg3[%c0_1, %c0_2] : memref<128x128xbf16, #tpu.memory_space<vmem>>, vector<128x128xbf16>
    %cst = arith.constant dense<0.000000e+00> : vector<8x128xf32>
    %2 = tpu.matmul %0, %1, %cst {dimension_numbers = #tpu.dot_dimension_numbers<[1], [0], [0], [1], [0, 0, 1, 1], [], []>} : vector<8x128xbf16>, vector<128x128xbf16>, vector<8x128xf32> -> vector<8x128xf32>
    %c0_3 = arith.constant 0 : index
    %c0_4 = arith.constant 0 : index
    %3 = vector.load %arg4[%c0_3, %c0_4] : memref<1x128xf32, #tpu.memory_space<vmem>>, vector<1x128xf32>
    %4 = vector.broadcast %3 : vector<1x128xf32> to vector<8x128xf32>
    %5 = arith.addf %2, %4 : vector<8x128xf32>
    %cst_5 = arith.constant 0.000000e+00 : f32
    %6 = vector.broadcast %cst_5 : f32 to vector<8x128xf32>
    %7 = arith.maximumf %5, %6 : vector<8x128xf32>
    %8 = arith.truncf %7 : vector<8x128xf32> to vector<8x128xbf16>
    %c0_6 = arith.constant 0 : index
    %c0_7 = arith.constant 0 : index
    %9 = vector.load %arg5[%c0_6, %c0_7] : memref<128x256xbf16, #tpu.memory_space<vmem>>, vector<128x256xbf16>
    %cst_8 = arith.constant dense<0.000000e+00> : vector<8x256xf32>
    %10 = tpu.matmul %8, %9, %cst_8 {dimension_numbers = #tpu.dot_dimension_numbers<[1], [0], [0], [1], [0, 0, 1, 1], [], []>} : vector<8x128xbf16>, vector<128x256xbf16>, vector<8x256xf32> -> vector<8x256xf32>
    %c0_9 = arith.constant 0 : index
    %c0_10 = arith.constant 0 : index
    %11 = vector.load %arg6[%c0_9, %c0_10] : memref<1x256xf32, #tpu.memory_space<vmem>>, vector<1x256xf32>
    %12 = vector.broadcast %11 : vector<1x256xf32> to vector<8x256xf32>
    %13 = arith.addf %10, %12 : vector<8x256xf32>
    %14 = vector.extract_strided_slice %13 {offsets = [0, 0], sizes = [8, 128], strides = [1, 1]} : vector<8x256xf32> to vector<8x128xf32>
    %15 = vector.extract_strided_slice %13 {offsets = [0, 128], sizes = [8, 128], strides = [1, 1]} : vector<8x256xf32> to vector<8x128xf32>
    %cst_11 = arith.constant 5.000000e-01 : f32
    %16 = vector.broadcast %cst_11 : f32 to vector<8x128xf32>
    %17 = arith.mulf %16, %15 : vector<8x128xf32>
    %18 = math.exp %17 : vector<8x128xf32>
    %c0_12 = arith.constant 0 : index
    %c0_13 = arith.constant 0 : index
    %19 = vector.load %arg2[%c0_12, %c0_13] : memref<8x128xbf16, #tpu.memory_space<vmem>>, vector<8x128xbf16>
    %20 = arith.extf %19 : vector<8x128xbf16> to vector<8x128xf32>
    %21 = arith.mulf %20, %18 : vector<8x128xf32>
    %22 = arith.addf %14, %21 : vector<8x128xf32>
    %23 = arith.truncf %22 : vector<8x128xf32> to vector<8x128xbf16>
    %c0_14 = arith.constant 0 : index
    %c0_15 = arith.constant 0 : index
    %24 = vector.load %arg7[%c0_14, %c0_15] : memref<128x128xbf16, #tpu.memory_space<vmem>>, vector<128x128xbf16>
    %cst_16 = arith.constant dense<0.000000e+00> : vector<8x128xf32>
    %25 = tpu.matmul %23, %24, %cst_16 {dimension_numbers = #tpu.dot_dimension_numbers<[1], [0], [0], [1], [0, 0, 1, 1], [], []>} : vector<8x128xbf16>, vector<128x128xbf16>, vector<8x128xf32> -> vector<8x128xf32>
    %c0_17 = arith.constant 0 : index
    %c0_18 = arith.constant 0 : index
    %26 = vector.load %arg8[%c0_17, %c0_18] : memref<1x128xf32, #tpu.memory_space<vmem>>, vector<1x128xf32>
    %27 = vector.broadcast %26 : vector<1x128xf32> to vector<8x128xf32>
    %28 = arith.addf %25, %27 : vector<8x128xf32>
    %cst_19 = arith.constant 0.000000e+00 : f32
    %29 = vector.broadcast %cst_19 : f32 to vector<8x128xf32>
    %30 = arith.maximumf %28, %29 : vector<8x128xf32>
    %31 = arith.truncf %30 : vector<8x128xf32> to vector<8x128xbf16>
    %c0_20 = arith.constant 0 : index
    %c0_21 = arith.constant 0 : index
    %32 = vector.load %arg9[%c0_20, %c0_21] : memref<128x128xbf16, #tpu.memory_space<vmem>>, vector<128x128xbf16>
    %cst_22 = arith.constant dense<0.000000e+00> : vector<8x128xf32>
    %33 = tpu.matmul %31, %32, %cst_22 {dimension_numbers = #tpu.dot_dimension_numbers<[1], [0], [0], [1], [0, 0, 1, 1], [], []>} : vector<8x128xbf16>, vector<128x128xbf16>, vector<8x128xf32> -> vector<8x128xf32>
    %c0_23 = arith.constant 0 : index
    %c0_24 = arith.constant 0 : index
    %34 = vector.load %arg10[%c0_23, %c0_24] : memref<1x128xf32, #tpu.memory_space<vmem>>, vector<1x128xf32>
    %35 = vector.broadcast %34 : vector<1x128xf32> to vector<8x128xf32>
    %36 = arith.addf %33, %35 : vector<8x128xf32>
    %37 = arith.negf %36 : vector<8x128xf32>
    %38 = math.exp %37 : vector<8x128xf32>
    %cst_25 = arith.constant 1.000000e+00 : f32
    %39 = vector.broadcast %cst_25 : f32 to vector<8x128xf32>
    %40 = arith.addf %39, %38 : vector<8x128xf32>
    %41 = arith.divf %39, %40 : vector<8x128xf32>
    %c0_26 = arith.constant 0 : index
    %c0_27 = arith.constant 0 : index
    %c0_28 = arith.constant 0 : index
    %42 = vector.load %arg11[%c0_26, %c0_27, %c0_28] : memref<3x8x128xf32, #tpu.memory_space<vmem>>, vector<1x8x128xf32>
    %43 = vector.shape_cast %42 : vector<1x8x128xf32> to vector<8x128xf32>
    %44 = vector.shape_cast %41 : vector<8x128xf32> to vector<1x8x128xf32>
    tpu.vector_store %arg11[%c0_26, %c0_27, %c0_28], %44 {strides = array<i32>} : memref<3x8x128xf32, #tpu.memory_space<vmem>>, vector<1x8x128xf32>,
    %c1 = arith.constant 1 : index
    %c0_29 = arith.constant 0 : index
    %c0_30 = arith.constant 0 : index
    %45 = vector.load %arg11[%c1, %c0_29, %c0_30] : memref<3x8x128xf32, #tpu.memory_space<vmem>>, vector<1x8x128xf32>
    %46 = vector.shape_cast %45 : vector<1x8x128xf32> to vector<8x128xf32>
    %47 = vector.shape_cast %14 : vector<8x128xf32> to vector<1x8x128xf32>
    tpu.vector_store %arg11[%c1, %c0_29, %c0_30], %47 {strides = array<i32>} : memref<3x8x128xf32, #tpu.memory_space<vmem>>, vector<1x8x128xf32>,
    %c2 = arith.constant 2 : index
    %c0_31 = arith.constant 0 : index
    %c0_32 = arith.constant 0 : index
    %48 = vector.load %arg11[%c2, %c0_31, %c0_32] : memref<3x8x128xf32, #tpu.memory_space<vmem>>, vector<1x8x128xf32>
    %49 = vector.shape_cast %48 : vector<1x8x128xf32> to vector<8x128xf32>
    %50 = vector.shape_cast %15 : vector<8x128xf32> to vector<1x8x128xf32>
    tpu.vector_store %arg11[%c2, %c0_31, %c0_32], %50 {strides = array<i32>} : memref<3x8x128xf32, #tpu.memory_space<vmem>>, vector<1x8x128xf32>,
    return
  }
  func.func @transform_0(%arg0: i32) -> (i32, i32) {
    %c0_i32 = arith.constant 0 : i32
    %c0_i32_0 = arith.constant 0 : i32
    return %arg0, %c0_i32 : i32, i32
  }
  func.func @transform_1(%arg0: i32) -> (i32, i32) {
    %c0_i32 = arith.constant 0 : i32
    %c0_i32_0 = arith.constant 0 : i32
    return %arg0, %c0_i32 : i32, i32
  }
  func.func @transform_2(%arg0: i32) -> (i32, i32) {
    %c0_i32 = arith.constant 0 : i32
    %c0_i32_0 = arith.constant 0 : i32
    %c0_i32_1 = arith.constant 0 : i32
    return %c0_i32, %c0_i32_0 : i32, i32
  }
  func.func @transform_3(%arg0: i32) -> (i32, i32) {
    %c0_i32 = arith.constant 0 : i32
    %c0_i32_0 = arith.constant 0 : i32
    %c0_i32_1 = arith.constant 0 : i32
    return %c0_i32, %c0_i32_0 : i32, i32
  }
  func.func @transform_4(%arg0: i32) -> (i32, i32) {
    %c0_i32 = arith.constant 0 : i32
    %c0_i32_0 = arith.constant 0 : i32
    %c0_i32_1 = arith.constant 0 : i32
    return %c0_i32, %c0_i32_0 : i32, i32
  }
  func.func @transform_5(%arg0: i32) -> (i32, i32) {
    %c0_i32 = arith.constant 0 : i32
    %c0_i32_0 = arith.constant 0 : i32
    %c0_i32_1 = arith.constant 0 : i32
    return %c0_i32, %c0_i32_0 : i32, i32
  }
  func.func @transform_6(%arg0: i32) -> (i32, i32) {
    %c0_i32 = arith.constant 0 : i32
    %c0_i32_0 = arith.constant 0 : i32
    %c0_i32_1 = arith.constant 0 : i32
    return %c0_i32, %c0_i32_0 : i32, i32
  }
  func.func @transform_7(%arg0: i32) -> (i32, i32) {
    %c0_i32 = arith.constant 0 : i32
    %c0_i32_0 = arith.constant 0 : i32
    %c0_i32_1 = arith.constant 0 : i32
    return %c0_i32, %c0_i32_0 : i32, i32
  }
  func.func @transform_8(%arg0: i32) -> (i32, i32) {
    %c0_i32 = arith.constant 0 : i32
    %c0_i32_0 = arith.constant 0 : i32
    %c0_i32_1 = arith.constant 0 : i32
    return %c0_i32, %c0_i32_0 : i32, i32
  }
  func.func @transform_9(%arg0: i32) -> (i32, i32) {
    %c0_i32 = arith.constant 0 : i32
    %c0_i32_0 = arith.constant 0 : i32
    %c0_i32_1 = arith.constant 0 : i32
    return %c0_i32, %c0_i32_0 : i32, i32
  }
  func.func @transform_10(%arg0: i32) -> (i32, i32, i32) {
    %c0_i32 = arith.constant 0 : i32
    %c0_i32_0 = arith.constant 0 : i32
    %c0_i32_1 = arith.constant 0 : i32
    return %c0_i32, %arg0, %c0_i32_0 : i32, i32, i32
  }
}

</mosaic_0001>

<bundles_post_ra>
// kernel: tpu_custom_call.1
= control target key start
LH: loop header
LB: loop body
LE: loop exit
PB: predicated region body
PF: predicated region fallthrough
CT: control target
= control target key end

     0   :  { %15 = vsyncpa [#allocation3], 0  ;;  %s1060_s0 = inlined_call_operand.hbm [shape: bf16[8,128], index: 0, kind: input, shape index: {}]   ;;  %s1061_s1 = inlined_call_operand.hbm [shape: bf16[8,128], index: 1, kind: input, shape index: {}]   ;;  %s1062_s2 = inlined_call_operand.hbm [shape: bf16[128,128], index: 2, kind: input, shape index: {}]   ;;  %s1063_s3 = inlined_call_operand.vmem [shape: f32[1,128], index: 3, kind: input, shape index: {}]   ;;  %s1064_s4 = inlined_call_operand.hbm [shape: bf16[128,256], index: 4, kind: input, shape index: {}]   ;;  %s1065_s5 = inlined_call_operand.vmem [shape: f32[1,256], index: 5, kind: input, shape index: {}]   ;;  %s1066_s6 = inlined_call_operand.hbm [shape: bf16[128,128], index: 6, kind: input, shape index: {}]   ;;  %s1067_s7 = inlined_call_operand.vmem [shape: f32[1,128], index: 7, kind: input, shape index: {}]   ;;  %s1068_s8 = inlined_call_operand.hbm [shape: bf16[128,128], index: 8, kind: input, shape index: {}]   ;;  %s1069_s9 = inlined_call_operand.vmem [shape: f32[1,128], index: 9, kind: input, shape index: {}]   ;;  %s1070_s10 = inlined_call_operand.hbm [shape: f32[3,8,128], index: 10, kind: output, shape index: {}]  }
   0x1   :  { %16 = vsyncpa [#allocation6], 0 }
   0x2   :  { %17 = vsyncpa [#allocation9], 0 }
   0x3   :  { %18 = vsyncpa [#allocation12], 0  ;;  %s36_s15 = sshll.u32 %s1061_s1, 4  ;;  %s37_s15 = int_to_ptr.hbm [resolvable:$true] %s36_s15 }
   0x4   :  { %19 = vsyncpa [#allocation4], 0  ;;  %s955_s16 = smov [#allocation5]   ;;  %s61_s20 = sshll.u32 %s1064_s4, 4  ;;  %s62_s20 = int_to_ptr.hbm [resolvable:$true] %s61_s20 }
   0x5   :  { %s38_s17 = sshll.u32 %s955_s16, 4  ;;  %s956_s21 = smov [#allocation8]   ;;  %s39_s17 = int_to_ptr.vmem [resolvable:$true] %s38_s17 }
   0x6   :  { %41 = dma.hbm_to_vmem [thread:$0]  %s37_s15, 64, %s39_s17, [#allocation6]  }
   0x7   :  { %s63_s22 = sshll.u32 %s956_s21, 4  ;;  %s957_s23 = smov 128   ;;  %s64_s22 = int_to_ptr.vmem [resolvable:$true] %s63_s22 }
   0x8   :  { %s958_s24 = smov 8   ;;  %s25_s26 = sshll.u32 %s1060_s0, 4  ;;  %s26_s26 = int_to_ptr.hbm [resolvable:$true] %s25_s26 }
   0x9   :  { %69 = dma.hbm_to_vmem [thread:$0]  %s62_s20, 2048, %s64_s22, [#allocation9], %s957_s23, %s957_s23, %s958_s24  }
   0xa   :  { %s959_s27 = smov [#allocation2]   ;;  %s46_s30 = sshll.u32 %s1062_s2, 4  ;;  %s47_s30 = int_to_ptr.hbm [resolvable:$true] %s46_s30 }
   0xb   :  { %s27_s28 = sshll.u32 %s959_s27, 4  ;;  %s960_s11 = smov [#allocation7]   ;;  %s28_s28 = int_to_ptr.vmem [resolvable:$true] %s27_s28 }
   0xc   :  { %30 = dma.hbm_to_vmem [thread:$0]  %s26_s26, 64, %s28_s28, [#allocation3]  }
   0xd   :  { %s48_s12 = sshll.u32 %s960_s11, 4  ;;  %s961_s13 = smov 64   ;;  %s49_s12 = int_to_ptr.vmem [resolvable:$true] %s48_s12 }
   0xe   :  { %s962_s14 = smov 4   ;;  %s76_s0 = sshll.u32 %s1066_s6, 4  ;;  %s77_s0 = int_to_ptr.hbm [resolvable:$true] %s76_s0 }
   0xf   :  { %54 = dma.hbm_to_vmem [thread:$0]  %s47_s30, 1024, %s49_s12, [#allocation6], %s961_s13, %s961_s13, %s962_s14  }
  0x10   :  { %s963_s17 = smov [#allocation10]   ;;  %s91_s2 = sshll.u32 %s1068_s8, 4  ;;  %s92_s2 = int_to_ptr.hbm [resolvable:$true] %s91_s2 }
  0x11   :  { %s78_s18 = sshll.u32 %s963_s17, 4  ;;  %s964_s21 = smov [#allocation11]   ;;  %s79_s18 = int_to_ptr.vmem [resolvable:$true] %s78_s18 }
  0x12   :  { %84 = dma.hbm_to_vmem [thread:$0]  %s77_s0, 1024, %s79_s18, [#allocation9], %s961_s13, %s961_s13, %s962_s14  }
  0x13   :  { %s93_s22 = sshll.u32 %s964_s21, 4  ;;  %s94_s22 = int_to_ptr.vmem [resolvable:$true] %s93_s22 }
  0x14   :  { %99 = dma.hbm_to_vmem [thread:$0]  %s92_s2, 1024, %s94_s22, [#allocation12], %s961_s13, %s961_s13, %s962_s14  }
  0x15   :  { %945 = dma.done.wait [#allocation3], 64  }
  0x16   :  { %946 = vsyncadd [#allocation3], 4294967232 }
  0x17   :  { %947 = dma.done.wait [#allocation6], 1088  }
  0x18   :  { %948 = vsyncadd [#allocation6], 4294966208 }
  0x19   :  { %949 = dma.done.wait [#allocation9], 3072  }
  0x1a   :  { %950 = vsyncadd [#allocation9], 4294964224 }
  0x1b   :  { %951 = dma.done.wait [#allocation12], 1024  }
  0x1c   :  { %952 = vsyncadd [#allocation12], 4294966272  ;;  %v724_v0 = vld [vmem:[#allocation7 + $0x38] sm:$0xff]  ;;  %v723_v1 = vld [vmem:[#allocation7 + $0x30] sm:$0xff] }
  0x1d   :  { %195 = vmatpush.bf16.msra.mxu0 %v724_v0  ;;  %v646_v2 = vld [vmem:[#allocation8 + $0x70] sm:$0xf]  ;;  %v740_v3 = vld [vmem:[#allocation8 + $0x74] sm:$0xf0]  ;;  %v739_v4 = vld [vmem:[#allocation8 + $0x74] sm:$0xf] }
  0x1e   :  { %v647_v5 = vor.u32 %v740_v3, %v646_v2  ;;  %v648_v6 = vld [vmem:[#allocation8 + $0x78] sm:$0xf0]  ;;  %v638_v7 = vld [vmem:[#allocation8 + $0x60] sm:$0xf]  ;;  %v738_v8 = vld [vmem:[#allocation8 + $0x64] sm:$0xf0] }
  0x1f   :  { %v651_v9 = vor.u32 %v739_v4, %v648_v6  ;;  %v737_v10 = vld [vmem:[#allocation8 + $0x64] sm:$0xf]  ;;  %v640_v11 = vld [vmem:[#allocation8 + $0x68] sm:$0xf0]  ;;  %v639_v13 = vor.u32 %v738_v8, %v638_v7  ;;  %v630_v15 = vld [vmem:[#allocation8 + $0x50] sm:$0xf] }
  0x20   :  { %v722_v12 = vld [vmem:[#allocation7 + $0x28] sm:$0xff]  ;;  %312 = vmatpush.bf16.msra.mxu1 %v647_v5  ;;  %v643_v14 = vor.u32 %v737_v10, %v640_v11  ;;  %v736_v16 = vld [vmem:[#allocation8 + $0x54] sm:$0xf0]  ;;  %v735_v17 = vld [vmem:[#allocation8 + $0x54] sm:$0xf] }
  0x21   :  { %196 = vmatpush.bf16.msra.mxu0 %v723_v1  ;;  %325 = vmatpush.bf16.msra.mxu2 %v651_v9  ;;  %v632_v18 = vld [vmem:[#allocation8 + $0x58] sm:$0xf0]  ;;  %v721_v19 = vld [vmem:[#allocation7 + $0x20] sm:$0xff]  ;;  %v631_v20 = vor.u32 %v736_v16, %v630_v15  ;;  %v734_v23 = vld [vmem:[#allocation8 + $0x44] sm:$0xf0] }
  0x22   :  { %v622_v21 = vld [vmem:[#allocation8 + $0x40] sm:$0xf]  ;;  %v635_v22 = vor.u32 %v735_v17, %v632_v18  ;;  %v733_v24 = vld [vmem:[#allocation8 + $0x44] sm:$0xf]  ;;  %v624_v25 = vld [vmem:[#allocation8 + $0x48] sm:$0xf0] }
  0x23   :  { %v720_v26 = vld [vmem:[#allocation7 + $0x18] sm:$0xff]  ;;  %v623_v27 = vor.u32 %v734_v23, %v622_v21  ;;  %v627_v28 = vor.u32 %v733_v24, %v624_v25  ;;  %v614_v29 = vld [vmem:[#allocation8 + $0x30] sm:$0xf]  ;;  %v731_v31 = vld [vmem:[#allocation8 + $0x34] sm:$0xf] }
  0x24   :  { %313 = vmatpush.bf16.msra.mxu1 %v639_v13  ;;  %v732_v30 = vld [vmem:[#allocation8 + $0x34] sm:$0xf0]  ;;  %v616_v32 = vld [vmem:[#allocation8 + $0x38] sm:$0xf0]  ;;  %v719_v33 = vld [vmem:[#allocation7 + $0x10] sm:$0xff] }
  0x25   :  { %197 = vmatpush.bf16.msra.mxu0 %v722_v12  ;;  %326 = vmatpush.bf16.msra.mxu2 %v643_v14  ;;  %v615_v34 = vor.u32 %v732_v30, %v614_v29  ;;  %v619_v35 = vor.u32 %v731_v31, %v616_v32  ;;  %v606_v36 = vld [vmem:[#allocation8 + $0x20] sm:$0xf]  ;;  %v730_v37 = vld [vmem:[#allocation8 + $0x24] sm:$0xf0]  ;;  %v729_v38 = vld [vmem:[#allocation8 + $0x24] sm:$0xf] }
  0x26   :  { %v608_v39 = vld [vmem:[#allocation8 + $0x28] sm:$0xf0]  ;;  %v607_v41 = vor.u32 %v730_v37, %v606_v36  ;;  %v717_v43 = vld [vmem:[#allocation7] sm:$0xff]  ;;  %v126_v44 = vld [vmem:[#allocation2] sm:$0xf] }
  0x27   :  { %v718_v40 = vld [vmem:[#allocation7 + $0x8] sm:$0xff]  ;;  %v611_v42 = vor.u32 %v729_v38, %v608_v39  ;;  %v598_v45 = vld [vmem:[#allocation8 + $0x10] sm:$0xf]  ;;  %v728_v46 = vld [vmem:[#allocation8 + $0x14] sm:$0xf0] }
  0x28   :  { %314 = vmatpush.bf16.msra.mxu1 %v631_v20  ;;  %v727_v47 = vld [vmem:[#allocation8 + $0x14] sm:$0xf]  ;;  %v599_v48 = vor.u32 %v728_v46, %v598_v45  ;;  %v600_v49 = vld [vmem:[#allocation8 + $0x18] sm:$0xf0]  ;;  %v590_v51 = vld [vmem:[#allocation8] sm:$0xf] }
  0x29   :  { %198 = vmatpush.bf16.msra.mxu0 %v721_v19  ;;  %327 = vmatpush.bf16.msra.mxu2 %v635_v22  ;;  %v603_v50 = vor.u32 %v727_v47, %v600_v49  ;;  %v726_v52 = vld [vmem:[#allocation8 + $0x4] sm:$0xf0]  ;;  %v725_v53 = vld [vmem:[#allocation8 + $0x4] sm:$0xf]  ;;  %v592_v55 = vld [vmem:[#allocation8 + $0x8] sm:$0xf0] }
  0x2a   :  { %v591_v54 = vor.u32 %v726_v52, %v590_v51  ;;  %v595_v56 = vor.u32 %v725_v53, %v592_v55  ;;  %v748_v57 = vld [vmem:[#allocation10 + $0x38] sm:$0xff]  ;;  %v747_v58 = vld [vmem:[#allocation10 + $0x30] sm:$0xff]  ;;  %v746_v1 = vld [vmem:[#allocation10 + $0x28] sm:$0xff] }
  0x2b   :  { %414 = vmatpush.bf16.msra.mxu3 %v748_v57  ;;  %v768_v59 = vld [vmem:[%s1063_s3] ss:$0 sm:$0xff]  ;;  %v745_v2 = vld [vmem:[#allocation10 + $0x20] sm:$0xff]  ;;  %v743_v4 = vld [vmem:[#allocation10 + $0x10] sm:$0xff] }
  0x2c   :  { %315 = vmatpush.bf16.msra.mxu1 %v623_v27  ;;  %v744_v3 = vld [vmem:[#allocation10 + $0x18] sm:$0xff]  ;;  %v742_v5 = vld [vmem:[#allocation10 + $0x8] sm:$0xff]  ;;  %v741_v6 = vld [vmem:[#allocation10] sm:$0xff] }
  0x2d   :  { %199 = vmatpush.bf16.msra.mxu0 %v720_v26  ;;  %328 = vmatpush.bf16.msra.mxu2 %v627_v28  ;;  %v226_v7 = vld [vmem:[%s1065_s5] sm:$0x3]  ;;  %v755_v9 = vld [vmem:[#allocation11 + $0x30] sm:$0xff]  ;;  %v754_v12 = vld [vmem:[#allocation11 + $0x28] sm:$0xff] }
  0x2e   :  { %v756_v8 = vld [vmem:[#allocation11 + $0x38] sm:$0xff]  ;;  %v228_v10 = vperm.slane %v226_v7, 0  ;;  %v229_v14 = vperm.slane %v226_v7, 1  ;;  %v753_v15 = vld [vmem:[#allocation11 + $0x20] sm:$0xff]  ;;  %v751_v22 = vld [vmem:[#allocation11 + $0x10] sm:$0xff] }
  0x2f   :  { %415 = vmatpush.bf16.msra.mxu3 %v747_v58  ;;  %v752_v19 = vld [vmem:[#allocation11 + $0x18] sm:$0xff]  ;;  %v750_v30 = vld [vmem:[#allocation11 + $0x8] sm:$0xff]  ;;  %v749_v31 = vld [vmem:[#allocation11] sm:$0xff] }
  0x30   :  { %316 = vmatpush.bf16.msra.mxu1 %v615_v34  ;;  %v341_v23 = vld [vmem:[#allocation5] sm:$0xf]  ;;  %v769_v32 = vld [vmem:[%s1067_s7] ss:$0 sm:$0xff]  ;;  %s965_s7 = smov [#allocation13]  }
  0x31   :  { %200 = vmatpush.bf16.msra.mxu0 %v719_v33  ;;  %329 = vmatpush.bf16.msra.mxu2 %v619_v35  ;;  %v342_v25 = vunpack.c.l.bf16 %v341_v23  ;;  %v770_v38 = vld [vmem:[%s1069_s9] ss:$0 sm:$0xff]  ;;  %s538_s28 = sshll.u32 %s965_s7, 4  ;;  %s540_s9 = sshll.u32 %s1070_s10, 4  ;;  %s539_s28 = int_to_ptr.vmem [resolvable:$true] %s538_s28  ;;  %s541_s9 = int_to_ptr.hbm [resolvable:$true] %s540_s9 }
  0x33   :  { %416 = vmatpush.bf16.msra.mxu3 %v746_v1 }
  0x34   :  { %317 = vmatpush.bf16.msra.mxu1 %v607_v41 }
  0x35   :  { %201 = vmatpush.bf16.msra.mxu0 %v718_v40  ;;  %330 = vmatpush.bf16.msra.mxu2 %v611_v42 }
  0x37   :  { %417 = vmatpush.bf16.msra.mxu3 %v745_v2 }
  0x38   :  { %318 = vmatpush.bf16.msra.mxu1 %v599_v48 }
  0x39   :  { %202 = vmatpush.bf16.msra.mxu0 %v717_v43  ;;  %331 = vmatpush.bf16.msra.mxu2 %v603_v50 }
  0x3b   :  { %418 = vmatpush.bf16.msra.mxu3 %v744_v3 }
  0x3c   :  { %203 = vmatmul.bf16.vlgmr.msra.gmra.mxu0 %v126_v44  ;;  %319 = vmatpush.bf16.msra.mxu1 %v591_v54 }
  0x3d   :  { %332 = vmatpush.bf16.msra.mxu2 %v595_v56  ;;  %497 = vmatpush.bf16.msrb.mxu0 %v756_v8 }
  0x3f   :  { %419 = vmatpush.bf16.msra.mxu3 %v743_v4 }
  0x41   :  { %498 = vmatpush.bf16.msrb.mxu0 %v755_v9 }
  0x43   :  { %420 = vmatpush.bf16.msra.mxu3 %v742_v5 }
  0x45   :  { %499 = vmatpush.bf16.msrb.mxu0 %v754_v12 }
  0x47   :  { %421 = vmatpush.bf16.msra.mxu3 %v741_v6 }
  0x49   :  { %500 = vmatpush.bf16.msrb.mxu0 %v753_v15 }
  0x4d   :  { %501 = vmatpush.bf16.msrb.mxu0 %v752_v19 }
  0x51   :  { %502 = vmatpush.bf16.msrb.mxu0 %v751_v22 }
  0x55   :  { %503 = vmatpush.bf16.msrb.mxu0 %v750_v30 }
  0x59   :  { %504 = vmatpush.bf16.msrb.mxu0 %v749_v31 }
  0xb9   :  { %v204_v60 = vpop.f32.mrf.mxu0 }
  0xba   :  { %v205_v61 = vadd.f32 %v768_v59, %v204_v60 }
  0xbc   :  { %v208_v62 = vmax.f32 %v205_v61, 0.0 }
  0xbe   :  { %v209_v63 = vpack.c.bf16 %v208_v62, %v208_v62 }
  0xc0   :  { %320 = vmatmul.bf16.vlgmr.msra.gmra.mxu1 %v209_v63  ;;  %333 = vmatmul.bf16.vlgmr.msra.gmra.mxu2 %v209_v63 }
  0xc1   :  { %v206_v0 = vpop.f32.mrf.mxu0 }
 0x13d   :  { %v321_v11 = vpop.f32.mrf.mxu1 }
 0x13e   :  { %v322_v13 = vadd.f32 %v321_v11, %v228_v10 }
 0x140   :  { %531 = vst [vmem:[#allocation13 + $0x8] sm:$0xff] %v322_v13 }
 0x143   :  { %v334_v16 = vpop.f32.mrf.mxu2 }
 0x144   :  { %v335_v17 = vadd.f32 %v334_v16, %v229_v14 }
 0x145   :  { %v323_v18 = vpop.f32.mrf.mxu1 }
 0x146   :  { %v338_v20 = vmul.f32 0.5, %v335_v17  ;;  %533 = vst [vmem:[#allocation13 + $0x10] sm:$0xff] %v335_v17 }
 0x148   :  { %v339_v21 = vmul.f32 1.442695, %v338_v20 }
 0x14a   :  { %771 = vpow2.f32 %v339_v21 }
 0x14b   :  { %v336_v24 = vpop.f32.mrf.mxu2 }
 0x150   :  { %v772_v26 = vpop.eup %771 }
 0x151   :  { %v343_v27 = vmul.f32 %v772_v26, %v342_v25 }
 0x153   :  { %v344_v28 = vadd.f32 %v343_v27, %v322_v13 }
 0x155   :  { %v345_v29 = vpack.c.bf16 %v344_v28, %v344_v28 }
 0x157   :  { %422 = vmatmul.bf16.vlgmr.msra.gmra.mxu3 %v345_v29 }
 0x1da   :  { %v423_v33 = vpop.f32.mrf.mxu3 }
 0x1db   :  { %v424_v34 = vadd.f32 %v769_v32, %v423_v33 }
 0x1dd   :  { %v427_v35 = vmax.f32 %v424_v34, 0.0 }
 0x1df   :  { %v428_v36 = vpack.c.bf16 %v427_v35, %v427_v35 }
 0x1e1   :  { %505 = vmatmul.bf16.vlgmr.msrb.gmra.mxu0 %v428_v36 }
 0x1e2   :  { %v425_v37 = vpop.f32.mrf.mxu3 }
 0x25e   :  { %v506_v39 = vpop.f32.mrf.mxu0 }
 0x25f   :  { %v507_v40 = vadd.f32 %v770_v38, %v506_v39 }
 0x261   :  { %v716_v41 = vmul.f32 -1.442695, %v507_v40 }
 0x263   :  { %773 = vpow2.f32 %v716_v41 }
 0x266   :  { %v508_v42 = vpop.f32.mrf.mxu0 }
 0x269   :  { %v774_v43 = vpop.eup %773 }
 0x26a   :  { %v513_v44 = vadd.f32 1.0, %v774_v43 }
 0x26c   :  { %775 = vrcp.f32 %v513_v44  ;;  %v525_v48 = vand.u32 2147483648, %v513_v44  ;;  %v523_v50 = vand.u32 2147483647, %v513_v44  ;;  %vm519_vm1 = vweird.f32 %v513_v44 }
 0x26e   :  { %v526_v52 = vor.u32 1.1754944e-38, %v525_v48  ;;  %vm524_vm3 = vcmp.eq.f32.partialorder %v523_v50, 8.507059e+37 }
 0x272   :  { %v776_v45 = vpop.eup %775 }
 0x273   :  { %v515_v46 = vmul.f32 %v776_v45, %v513_v44  ;;  %vm520_vm0 = vweird.f32 %v776_v45 }
 0x274   :  { %vm521_vm2 = vmor %vm519_vm1, %vm520_vm0 }
 0x275   :  { %v516_v47 = vsub.f32 1.0, %v515_v46 }
 0x277   :  { %v517_v49 = vmul.f32 %v776_v45, %v516_v47 }
 0x279   :  { %v518_v51 = vadd.f32 %v776_v45, %v517_v49 }
 0x27b   :  { %v522_v53 = vsel %vm521_vm2, %v776_v45, %v518_v51 }
 0x27c   :  { %v527_v54 = vsel %vm524_vm3, %v526_v52, %v522_v53 }
 0x27d   :  { %529 = vst [vmem:[#allocation13] sm:$0xff] %v527_v54 }
 0x27e   :  { %546 = dma.vmem_to_hbm [thread:$0]  %s539_s28, 384, %s541_s9, [#allocation4], %s957_s23, %s957_s23, %s958_s24  }
 0x27f   :  { %953 = dma.done.wait [#allocation4], 384  }
 0x280   :  { %954 = vsyncadd [#allocation4], 4294966912 }
 0x281   :  { %551 = vsyncpa [#allocation3], 1 }
 0x282   :  { %552 = vsyncpa [#allocation6], 1 }
 0x283   :  { %553 = vsyncpa [#allocation9], 1 }
 0x284   :  { %554 = vsyncpa [#allocation12], 1 }
 0x285   :  { %555 = vsyncpa [#allocation4], 1 }

</bundles_post_ra>
